<compile_context>
chip_gen: v6e
topology: v6e:2x2x1
jax: 0.10.0
libtpu: 0.0.40
codegen_flags: <defaults>
</compile_context>

<pallas_src>
import math
import functools

import jax
import jax.numpy as jnp
from jax import lax
from jax.experimental import pallas as pl
from jax.experimental.pallas import tpu as pltpu


# ----------------------------- shared math -----------------------------

def _layernorm(x, w, b, eps=1e-5):
    # PyTorch LayerNorm: biased variance over the last axis, eps=1e-5.
    mu = jnp.mean(x, axis=-1, keepdims=True)
    var = jnp.mean((x - mu) ** 2, axis=-1, keepdims=True)
    return (x - mu) * lax.rsqrt(var + eps) * w + b


def _gelu_exact(x):
    # PyTorch nn.GELU() default (approximate='none'): 0.5*x*(1+erf(x/sqrt(2)))
    return 0.5 * x * (1.0 + lax.erf(x / math.sqrt(2.0)))


# ----------------------- kernel 1: LN1 + attention ----------------------

def attention_kernel(x_ref, ln1w_ref, ln1b_ref,
                     wq_ref, wk_ref, wv_ref, bq_ref, bk_ref, bv_ref,
                     wpr_ref, bpr_ref,
                     y_ref, k_ref, v_ref,
                     ln_scratch, acc_scratch, *, causal):
    h = pl.program_id(1)
    n_head = pl.num_programs(1)

    @pl.when(h == 0)
    def _init():
        x = x_ref[0]                                          # (T, C) f32
        ln_scratch[...] = _layernorm(x, ln1w_ref[...], ln1b_ref[...])
        # start the accumulator with the residual + output-projection bias
        acc_scratch[...] = x + bpr_ref[...]

    cd = wq_ref.dtype                                         # matmul dtype
    ln = ln_scratch[...].astype(cd)                           # (T, C)

    # this head's q / k / v: (T, C) @ (C, Dh) + (1, Dh), f32 accumulation
    q = jnp.dot(ln, wq_ref[0], preferred_element_type=jnp.float32) + bq_ref[0]
    k = jnp.dot(ln, wk_ref[0], preferred_element_type=jnp.float32) + bk_ref[0]
    v = jnp.dot(ln, wv_ref[0], preferred_element_type=jnp.float32) + bv_ref[0]

    # KV cache outputs, PyTorch layout (B, H, T, Dh)
    k_ref[0, 0] = k
    v_ref[0, 0] = v

    T, Dh = q.shape
    scale = 1.0 / math.sqrt(Dh)

    # q @ k^T without transposing k: contract the last dim of both operands.
    att = lax.dot_general(q.astype(cd), k.astype(cd),
                          dimension_numbers=(((1,), (1,)), ((), ())),
                          preferred_element_type=jnp.float32) * scale
    if causal:
        # causal mask built in-kernel (a couple of VPU ops, no (T,T) DMA).
        # Large finite negative instead of -inf so a fully-masked row could
        # never NaN the softmax.
        row = lax.broadcasted_iota(jnp.int32, (T, T), 0)
        col = lax.broadcasted_iota(jnp.int32, (T, T), 1)
        att = jnp.where(row >= col, att, -1e30)

    # softmax in f32; 1/denominator on the EUP (approx reciprocal).
    att = att - jnp.max(att, axis=-1, keepdims=True)
    p = jnp.exp(att)
    p = p * pl.reciprocal(jnp.sum(p, axis=-1, keepdims=True), approx=True)

    ctx = jnp.dot(p.astype(cd), v.astype(cd),
                  preferred_element_type=jnp.float32)         # (T, Dh)

    # this head's slice of the output projection, accumulated across heads
    acc_scratch[...] += jnp.dot(ctx.astype(cd), wpr_ref[0],
                                preferred_element_type=jnp.float32)

    @pl.when(h == n_head - 1)
    def _finalize():
        y_ref[0] = acc_scratch[...]                           # x + attn_proj


def _attention_call(x, ap, *, causal, vmem_limit):
    B, T, C = x.shape
    H = ap['wq'].shape[0]
    Dh = C // H

    in_specs = [
        pl.BlockSpec((1, T, C),   lambda b, h: (b, 0, 0)),    # x
        pl.BlockSpec((1, C),      lambda b, h: (0, 0)),       # ln1_w
        pl.BlockSpec((1, C),      lambda b, h: (0, 0)),       # ln1_b
        pl.BlockSpec((1, C, Dh),  lambda b, h: (h, 0, 0)),    # wq  (H, C, Dh)
        pl.BlockSpec((1, C, Dh),  lambda b, h: (h, 0, 0)),    # wk
        pl.BlockSpec((1, C, Dh),  lambda b, h: (h, 0, 0)),    # wv
        pl.BlockSpec((1, 1, Dh),  lambda b, h: (h, 0, 0)),    # bq  (H, 1, Dh)
        pl.BlockSpec((1, 1, Dh),  lambda b, h: (h, 0, 0)),    # bk
        pl.BlockSpec((1, 1, Dh),  lambda b, h: (h, 0, 0)),    # bv
        pl.BlockSpec((1, Dh, C),  lambda b, h: (h, 0, 0)),    # wproj (H, Dh, C)
        pl.BlockSpec((1, C),      lambda b, h: (0, 0)),       # bproj
    ]
    out_specs = [
        pl.BlockSpec((1, T, C),     lambda b, h: (b, 0, 0)),     # y
        pl.BlockSpec((1, 1, T, Dh), lambda b, h: (b, h, 0, 0)),  # k cache
        pl.BlockSpec((1, 1, T, Dh), lambda b, h: (b, h, 0, 0)),  # v cache
    ]
    out_shape = [
        jax.ShapeDtypeStruct((B, T, C), jnp.float32),
        jax.ShapeDtypeStruct((B, H, T, Dh), jnp.float32),
        jax.ShapeDtypeStruct((B, H, T, Dh), jnp.float32),
    ]
    scratch = [pltpu.VMEM((T, C), jnp.float32),   # LN1(x), computed once per b
               pltpu.VMEM((T, C), jnp.float32)]   # f32 accumulator

    y, k_cache, v_cache = pl.pallas_call(
        functools.partial(attention_kernel, causal=causal),
        out_shape=out_shape,
        grid_spec=pltpu.PrefetchScalarGridSpec(
            num_scalar_prefetch=0, grid=(B, H),
            in_specs=in_specs, out_specs=out_specs, scratch_shapes=scratch),
        compiler_params=pltpu.CompilerParams(
            dimension_semantics=("parallel", "arbitrary"),
            vmem_limit_bytes=vmem_limit),
    )(x, ap['ln1_w'], ap['ln1_b'],
      ap['wq'], ap['wk'], ap['wv'], ap['bq'], ap['bk'], ap['bv'],
      ap['wproj'], ap['bproj'])
    return y, k_cache, v_cache


# -------------------------- kernel 2: LN2 + MLP --------------------------

def mlp_kernel(x_ref, ln2w_ref, ln2b_ref, wfc_ref, bfc_ref,
               wpr_ref, bpr_ref, o_ref):
    x = x_ref[0]                                              # (tq, C) f32
    h = _layernorm(x, ln2w_ref[...], ln2b_ref[...])
    cd = wfc_ref.dtype
    fc = jnp.dot(h.astype(cd), wfc_ref[...],
                 preferred_element_type=jnp.float32) + bfc_ref[...]
    fc = _gelu_exact(fc)                                      # f32 exact GELU
    mlp = jnp.dot(fc.astype(cd), wpr_ref[...],
                  preferred_element_type=jnp.float32) + bpr_ref[...]
    o_ref[0] = x + mlp                                        # residual 2


def _mlp_call(x, mp, *, tq, vmem_limit):
    B, T, C = x.shape
    F = mp['wfc'].shape[1]                                    # 4*C

    in_specs = [
        pl.BlockSpec((1, tq, C), lambda b, t: (b, t, 0)),     # x (T tiled)
        pl.BlockSpec((1, C),     lambda b, t: (0, 0)),        # ln2_w
        pl.BlockSpec((1, C),     lambda b, t: (0, 0)),        # ln2_b
        pl.BlockSpec((C, F),     lambda b, t: (0, 0)),        # wfc   (in, out)
        pl.BlockSpec((1, F),     lambda b, t: (0, 0)),        # bfc
        pl.BlockSpec((F, C),     lambda b, t: (0, 0)),        # wproj2 (in, out)
        pl.BlockSpec((1, C),     lambda b, t: (0, 0)),        # bproj2
    ]
    return pl.pallas_call(
        mlp_kernel,
        out_shape=jax.ShapeDtypeStruct((B, T, C), jnp.float32),
        grid_spec=pltpu.PrefetchScalarGridSpec(
            num_scalar_prefetch=0, grid=(B, T // tq),
            in_specs=in_specs,
            out_specs=pl.BlockSpec((1, tq, C), lambda b, t: (b, t, 0))),
        compiler_params=pltpu.CompilerParams(
            dimension_semantics=("parallel", "parallel"),
            vmem_limit_bytes=vmem_limit),
    )(x, mp['ln2_w'], mp['ln2_b'], mp['wfc'], mp['bfc'],
      mp['wproj2'], mp['bproj2'])


# ------------------------------ wrappers --------------------------------

def _prepare_block_params(p, n_head, compute_dtype):
    """PyTorch-layout params -> kernel-ready layout (done once, outside kernels).

    Linear weights (out, in) are transposed to (in, out); the QKV and attention
    output-projection weights are additionally split per head; matmul weights
    are cast to `compute_dtype` (biases / LN params stay f32).
    """
    C = p['ln1_w'].shape[-1]
    H = n_head
    Dh = C // H
    cd = compute_dtype

    wqkv_t = p['wqkv'].T                                      # (C, 3C) (in,out)
    wq, wk, wv = wqkv_t[:, :C], wqkv_t[:, C:2 * C], wqkv_t[:, 2 * C:]

    def per_head(w):                                          # (C, C)->(H, C, Dh)
        return w.reshape(C, H, Dh).transpose(1, 0, 2).astype(cd)

    bqkv = p['bqkv'].reshape(3 * C)
    bq = bqkv[0 * C:1 * C].reshape(H, 1, Dh)
    bk = bqkv[1 * C:2 * C].reshape(H, 1, Dh)
    bv = bqkv[2 * C:3 * C].reshape(H, 1, Dh)

    attn_params = {
        'ln1_w': p['ln1_w'].reshape(1, C),
        'ln1_b': p['ln1_b'].reshape(1, C),
        'wq': per_head(wq), 'wk': per_head(wk), 'wv': per_head(wv),
        'bq': bq, 'bk': bk, 'bv': bv,
        'wproj': p['wproj'].T.reshape(H, Dh, C).astype(cd),   # per-head rows
        'bproj': p['bproj'].reshape(1, C),
    }
    mlp_params = {
        'ln2_w': p['ln2_w'].reshape(1, C),
        'ln2_b': p['ln2_b'].reshape(1, C),
        'wfc': p['wfc'].T.astype(cd),                         # (C, 4C)
        'bfc': p['bfc'].reshape(1, 4 * C),
        'wproj2': p['wproj2'].T.astype(cd),                   # (4C, C)
        'bproj2': p['bproj2'].reshape(1, C),
    }
    return attn_params, mlp_params


def _vmem_limit(block_bytes, scratch_bytes=0):
    # double-buffered blocks + persistent scratch + headroom for intermediates
    want = 2 * block_bytes + scratch_bytes + (8 << 20)
    return int(min(max(want, 16 << 20), 64 << 20))


def block_forward(x, params, n_head, *, causal=True,
                  compute_dtype=jnp.float32, tq=None):
    """Pallas forward of the PyTorch `Block`.

    Returns (y, (k, v)) like the module (k/v in (B, n_head, T, head_dim)).
    `causal=True` matches passing the usual torch.tril causal mask;
    `causal=False` matches `mask=None`.  dropout == 0.
    """
    B, T, C = x.shape
    assert C % n_head == 0
    Dh = C // n_head
    assert C % 128 == 0, "keep n_embd lane-dense (multiple of 128)"
    assert Dh % 8 == 0

    if tq is None:
        tq = T
        for cand in (512, 256, 128, 64, 32, 16, 8):
            if T % cand == 0:
                tq = cand
                break
    assert T % tq == 0 and (tq % 8 == 0 or tq == T)

    ap, mp = _prepare_block_params(params, n_head, compute_dtype)
    wbytes = jnp.dtype(compute_dtype).itemsize

    attn_blocks = (2 * T * C * 4                 # x block + y block
                   + 2 * T * Dh * 4              # k / v cache blocks
                   + 3 * C * Dh * wbytes         # per-head wq / wk / wv
                   + Dh * C * wbytes             # per-head out-proj slice
                   + (3 * Dh + 3 * C) * 4)       # biases + ln1 w/b
    attn_vmem = _vmem_limit(attn_blocks, scratch_bytes=2 * T * C * 4)

    F = 4 * C
    mlp_blocks = (2 * tq * C * 4                 # x block + out block
                  + (C * F + F * C) * wbytes     # wfc + wproj2
                  + (F + 3 * C) * 4              # biases + ln2 w/b
                  + tq * F * 4)                  # fc intermediate
    mlp_vmem = _vmem_limit(mlp_blocks)

    y_attn, k_cache, v_cache = _attention_call(
        x, ap, causal=causal, vmem_limit=attn_vmem)
    y = _mlp_call(y_attn, mp, tq=tq, vmem_limit=mlp_vmem)
    return y, (k_cache, v_cache)


# ----------------------- pure-JAX reference Block ------------------------

def reference_block(x, p, n_head, causal=True):
    B, T, C = x.shape
    Dh = C // n_head
    h = _layernorm(x, p['ln1_w'], p['ln1_b'])
    qkv = h @ p['wqkv'].T + p['bqkv']
    q, k, v = jnp.split(qkv, 3, axis=-1)
    q = q.reshape(B, T, n_head, Dh).transpose(0, 2, 1, 3)
    k = k.reshape(B, T, n_head, Dh).transpose(0, 2, 1, 3)
    v = v.reshape(B, T, n_head, Dh).transpose(0, 2, 1, 3)
    att = (q @ jnp.swapaxes(k, -1, -2)) * (1.0 / math.sqrt(Dh))
    if causal:
        mask = jnp.tril(jnp.ones((T, T), bool))
        att = jnp.where(mask[None, None], att, -jnp.inf)
    att = jax.nn.softmax(att, axis=-1)
    out = (att @ v).transpose(0, 2, 1, 3).reshape(B, T, C)
    y = x + out @ p['wproj'].T + p['bproj']
    h2 = _layernorm(y, p['ln2_w'], p['ln2_b'])
    fc = _gelu_exact(h2 @ p['wfc'].T + p['bfc'])
    y = y + fc @ p['wproj2'].T + p['bproj2']
    return y, (k, v)


# ------------------------------ param init -------------------------------

def make_block_params(key, n_embd):
    C = n_embd

    def normal(k, shape, s=0.02):
        return (s * jax.random.normal(k, shape)).astype(jnp.float32)

    ks = jax.random.split(key, 12)
    return {
        'ln1_w': (1.0 + 0.1 * jax.random.normal(ks[0], (C,))).astype(jnp.float32),
        'ln1_b': normal(ks[1], (C,)),
        'wqkv': normal(ks[2], (3 * C, C)),
        'bqkv': normal(ks[3], (3 * C,)),
        'wproj': normal(ks[4], (C, C)),
        'bproj': normal(ks[5], (C,)),
        'ln2_w': (1.0 + 0.1 * jax.random.normal(ks[6], (C,))).astype(jnp.float32),
        'ln2_b': normal(ks[7], (C,)),
        'wfc': normal(ks[8], (4 * C, C)),
        'bfc': normal(ks[9], (4 * C,)),
        'wproj2': normal(ks[10], (C, 4 * C)),
        'bproj2': normal(ks[11], (C,)),
    }


# --------------------------------- main -----------------------------------

if __name__ == "__main__":
    # Small config: n_embd=128 (lane-dense), n_head=4 (head_dim=32), batch=2,
    # seq=16, MLP tiled over the sequence with tq=8.
    B, T, C, H = 2, 16, 128, 4

    key = jax.random.PRNGKey(0)
    kx, kp = jax.random.split(key)
    x = (0.02 * jax.random.normal(kx, (B, T, C))).astype(jnp.float32)
    params = make_block_params(kp, C)

    y_ref, (k_ref, v_ref) = reference_block(x, params, H, causal=True)

    # 1) causal (torch.tril mask) path, f32 matmuls
    y, (kc, vc) = block_forward(x, params, H, causal=True,
                                compute_dtype=jnp.float32, tq=8)
    y = jax.block_until_ready(y)
    assert y.shape == (B, T, C)
    assert kc.shape == (B, H, T, C // H) and vc.shape == (B, H, T, C // H)
    for got, ref, name in ((y, y_ref, 'y'), (kc, k_ref, 'k'), (vc, v_ref, 'v')):
        err = jnp.max(jnp.abs(got - ref))
        assert jnp.allclose(got, ref, atol=5e-3, rtol=5e-3), \
            f"{name} max abs err {err}"

    # 2) bf16 matmul path (v6e/v7x MXU; f32 accumulation, f32 LN/softmax/GELU)
    y16, (k16, v16) = block_forward(x, params, H, causal=True,
                                    compute_dtype=jnp.bfloat16, tq=8)
    y16 = jax.block_until_ready(y16)
    assert jnp.allclose(y16, y_ref, atol=3e-2, rtol=3e-2), \
        f"bf16 y max abs err {jnp.max(jnp.abs(y16 - y_ref))}"
    assert jnp.allclose(k16, k_ref, atol=3e-2, rtol=3e-2)
    assert jnp.allclose(v16, v_ref, atol=3e-2, rtol=3e-2)

    # 3) mask=None path (no masking), f32
    yn, _ = block_forward(x, params, H, causal=False, compute_dtype=jnp.float32)
    yn = jax.block_until_ready(yn)
    yn_ref, _ = reference_block(x, params, H, causal=False)
    assert jnp.allclose(yn, yn_ref, atol=5e-3, rtol=5e-3), \
        f"no-mask max abs err {jnp.max(jnp.abs(yn - yn_ref))}"

    print("KERNEL_OK")
</pallas_src>

<mosaic_0001>
module attributes {stable_mosaic.version = 11 : i64} {
  func.func @attention_kernel(%arg0: i32, %arg1: i32, %arg2: memref<1x16x128xf32, #tpu.memory_space<vmem>>, %arg3: memref<1x128xf32, #tpu.memory_space<vmem>>, %arg4: memref<1x128xf32, #tpu.memory_space<vmem>>, %arg5: memref<1x128x32xf32, #tpu.memory_space<vmem>>, %arg6: memref<1x128x32xf32, #tpu.memory_space<vmem>>, %arg7: memref<1x128x32xf32, #tpu.memory_space<vmem>>, %arg8: memref<1x1x32xf32, #tpu.memory_space<vmem>>, %arg9: memref<1x1x32xf32, #tpu.memory_space<vmem>>, %arg10: memref<1x1x32xf32, #tpu.memory_space<vmem>>, %arg11: memref<1x32x128xf32, #tpu.memory_space<vmem>>, %arg12: memref<1x128xf32, #tpu.memory_space<vmem>>, %arg13: memref<1x16x128xf32, #tpu.memory_space<vmem>>, %arg14: memref<1x1x16x32xf32, #tpu.memory_space<vmem>>, %arg15: memref<1x1x16x32xf32, #tpu.memory_space<vmem>>, %arg16: memref<16x128xf32, #tpu.memory_space<vmem>>, %arg17: memref<16x128xf32, #tpu.memory_space<vmem>>) attributes {dimension_semantics = [#tpu.dimension_semantics<parallel>, #tpu.dimension_semantics<arbitrary>], iteration_bounds = array<i64: 2, 4>, scalar_prefetch = 0 : i64, scratch_operands = 2 : i64, tpu.core_type = #tpu.core_type<tc>, window_params = [{transform_indices = @transform_0, window_bounds = array<i64: 1, 16, 128>}, {pipeline_mode = #tpu.pipeline_mode<synchronous>, transform_indices = @transform_1, window_bounds = array<i64: 1, 128>}, {pipeline_mode = #tpu.pipeline_mode<synchronous>, transform_indices = @transform_2, window_bounds = array<i64: 1, 128>}, {transform_indices = @transform_3, window_bounds = array<i64: 1, 128, 32>}, {transform_indices = @transform_4, window_bounds = array<i64: 1, 128, 32>}, {transform_indices = @transform_5, window_bounds = array<i64: 1, 128, 32>}, {transform_indices = @transform_6, window_bounds = array<i64: 1, 1, 32>}, {transform_indices = @transform_7, window_bounds = array<i64: 1, 1, 32>}, {transform_indices = @transform_8, window_bounds = array<i64: 1, 1, 32>}, {transform_indices = @transform_9, window_bounds = array<i64: 1, 32, 128>}, {pipeline_mode = #tpu.pipeline_mode<synchronous>, transform_indices = @transform_10, window_bounds = array<i64: 1, 128>}, {transform_indices = @transform_11, window_bounds = array<i64: 1, 16, 128>}, {transform_indices = @transform_12, window_bounds = array<i64: 1, 1, 16, 32>}, {transform_indices = @transform_13, window_bounds = array<i64: 1, 1, 16, 32>}]} {
    %c0_i32 = arith.constant 0 : i32
    %0 = arith.cmpi eq, %arg1, %c0_i32 : i32
    %1 = arith.extui %0 : i1 to i32
    %c0_i32_0 = arith.constant 0 : i32
    %2 = arith.cmpi ne, %1, %c0_i32_0 : i32
    scf.if %2 {
      %c0_45 = arith.constant 0 : index
      %c0_46 = arith.constant 0 : index
      %c0_47 = arith.constant 0 : index
      %59 = vector.load %arg2[%c0_45, %c0_46, %c0_47] : memref<1x16x128xf32, #tpu.memory_space<vmem>>, vector<1x16x128xf32>
      %60 = vector.shape_cast %59 : vector<1x16x128xf32> to vector<16x128xf32>
      %c0_48 = arith.constant 0 : index
      %c0_49 = arith.constant 0 : index
      %61 = vector.load %arg3[%c0_48, %c0_49] : memref<1x128xf32, #tpu.memory_space<vmem>>, vector<1x128xf32>
      %c0_50 = arith.constant 0 : index
      %c0_51 = arith.constant 0 : index
      %62 = vector.load %arg4[%c0_50, %c0_51] : memref<1x128xf32, #tpu.memory_space<vmem>>, vector<1x128xf32>
      %cst_52 = arith.constant dense<0.000000e+00> : vector<16xf32>
      %63 = vector.multi_reduction <add>, %60, %cst_52 [1] : vector<16x128xf32> to vector<16xf32>
      %64 = vector.shape_cast %63 : vector<16xf32> to vector<16x1xf32>
      %cst_53 = arith.constant 1.280000e+02 : f32
      %65 = vector.broadcast %cst_53 : f32 to vector<16x1xf32>
      %66 = arith.divf %64, %65 : vector<16x1xf32>
      %67 = vector.broadcast %66 : vector<16x1xf32> to vector<16x128xf32>
      %68 = arith.subf %60, %67 : vector<16x128xf32>
      %69 = arith.mulf %68, %68 : vector<16x128xf32>
      %cst_54 = arith.constant dense<0.000000e+00> : vector<16xf32>
      %70 = vector.multi_reduction <add>, %69, %cst_54 [1] : vector<16x128xf32> to vector<16xf32>
      %71 = vector.shape_cast %70 : vector<16xf32> to vector<16x1xf32>
      %cst_55 = arith.constant 1.280000e+02 : f32
      %72 = vector.broadcast %cst_55 : f32 to vector<16x1xf32>
      %73 = arith.divf %71, %72 : vector<16x1xf32>
      %74 = vector.broadcast %66 : vector<16x1xf32> to vector<16x128xf32>
      %75 = arith.subf %60, %74 : vector<16x128xf32>
      %cst_56 = arith.constant 9.99999974E-6 : f32
      %76 = vector.broadcast %cst_56 : f32 to vector<16x1xf32>
      %77 = arith.addf %73, %76 : vector<16x1xf32>
      %78 = math.rsqrt %77 : vector<16x1xf32>
      %79 = vector.broadcast %78 : vector<16x1xf32> to vector<16x128xf32>
      %80 = arith.mulf %75, %79 : vector<16x128xf32>
      %81 = vector.broadcast %61 : vector<1x128xf32> to vector<16x128xf32>
      %82 = arith.mulf %80, %81 : vector<16x128xf32>
      %83 = vector.broadcast %62 : vector<1x128xf32> to vector<16x128xf32>
      %84 = arith.addf %82, %83 : vector<16x128xf32>
      %c0_57 = arith.constant 0 : index
      %c0_58 = arith.constant 0 : index
      %85 = vector.load %arg16[%c0_57, %c0_58] : memref<16x128xf32, #tpu.memory_space<vmem>>, vector<16x128xf32>
      tpu.vector_store %arg16[%c0_57, %c0_58], %84 {strides = array<i32>} : memref<16x128xf32, #tpu.memory_space<vmem>>, vector<16x128xf32>,
      %c0_59 = arith.constant 0 : index
      %c0_60 = arith.constant 0 : index
      %86 = vector.load %arg12[%c0_59, %c0_60] : memref<1x128xf32, #tpu.memory_space<vmem>>, vector<1x128xf32>
      %87 = vector.broadcast %86 : vector<1x128xf32> to vector<16x128xf32>
      %88 = arith.addf %60, %87 : vector<16x128xf32>
      %c0_61 = arith.constant 0 : index
      %c0_62 = arith.constant 0 : index
      %89 = vector.load %arg17[%c0_61, %c0_62] : memref<16x128xf32, #tpu.memory_space<vmem>>, vector<16x128xf32>
      tpu.vector_store %arg17[%c0_61, %c0_62], %88 {strides = array<i32>} : memref<16x128xf32, #tpu.memory_space<vmem>>, vector<16x128xf32>,
    } else {
    }
    %c0 = arith.constant 0 : index
    %c0_1 = arith.constant 0 : index
    %3 = vector.load %arg16[%c0, %c0_1] : memref<16x128xf32, #tpu.memory_space<vmem>>, vector<16x128xf32>
    %c0_2 = arith.constant 0 : index
    %c0_3 = arith.constant 0 : index
    %c0_4 = arith.constant 0 : index
    %4 = vector.load %arg5[%c0_2, %c0_3, %c0_4] : memref<1x128x32xf32, #tpu.memory_space<vmem>>, vector<1x128x32xf32>
    %5 = vector.shape_cast %4 : vector<1x128x32xf32> to vector<128x32xf32>
    %cst = arith.constant dense<0.000000e+00> : vector<16x32xf32>
    %6 = tpu.matmul %3, %5, %cst {dimension_numbers = #tpu.dot_dimension_numbers<[1], [0], [0], [1], [0, 0, 1, 1], [], []>} : vector<16x128xf32>, vector<128x32xf32>, vector<16x32xf32> -> vector<16x32xf32>
    %c0_5 = arith.constant 0 : index
    %c0_6 = arith.constant 0 : index
    %c0_7 = arith.constant 0 : index
    %7 = vector.load %arg8[%c0_5, %c0_6, %c0_7] : memref<1x1x32xf32, #tpu.memory_space<vmem>>, vector<1x1x32xf32>
    %8 = vector.shape_cast %7 : vector<1x1x32xf32> to vector<1x32xf32>
    %9 = vector.broadcast %8 : vector<1x32xf32> to vector<16x32xf32>
    %10 = arith.addf %6, %9 : vector<16x32xf32>
    %c0_8 = arith.constant 0 : index
    %c0_9 = arith.constant 0 : index
    %c0_10 = arith.constant 0 : index
    %11 = vector.load %arg6[%c0_8, %c0_9, %c0_10] : memref<1x128x32xf32, #tpu.memory_space<vmem>>, vector<1x128x32xf32>
    %12 = vector.shape_cast %11 : vector<1x128x32xf32> to vector<128x32xf32>
    %cst_11 = arith.constant dense<0.000000e+00> : vector<16x32xf32>
    %13 = tpu.matmul %3, %12, %cst_11 {dimension_numbers = #tpu.dot_dimension_numbers<[1], [0], [0], [1], [0, 0, 1, 1], [], []>} : vector<16x128xf32>, vector<128x32xf32>, vector<16x32xf32> -> vector<16x32xf32>
    %c0_12 = arith.constant 0 : index
    %c0_13 = arith.constant 0 : index
    %c0_14 = arith.constant 0 : index
    %14 = vector.load %arg9[%c0_12, %c0_13, %c0_14] : memref<1x1x32xf32, #tpu.memory_space<vmem>>, vector<1x1x32xf32>
    %15 = vector.shape_cast %14 : vector<1x1x32xf32> to vector<1x32xf32>
    %16 = vector.broadcast %15 : vector<1x32xf32> to vector<16x32xf32>
    %17 = arith.addf %13, %16 : vector<16x32xf32>
    %c0_15 = arith.constant 0 : index
    %c0_16 = arith.constant 0 : index
    %c0_17 = arith.constant 0 : index
    %18 = vector.load %arg7[%c0_15, %c0_16, %c0_17] : memref<1x128x32xf32, #tpu.memory_space<vmem>>, vector<1x128x32xf32>
    %19 = vector.shape_cast %18 : vector<1x128x32xf32> to vector<128x32xf32>
    %cst_18 = arith.constant dense<0.000000e+00> : vector<16x32xf32>
    %20 = tpu.matmul %3, %19, %cst_18 {dimension_numbers = #tpu.dot_dimension_numbers<[1], [0], [0], [1], [0, 0, 1, 1], [], []>} : vector<16x128xf32>, vector<128x32xf32>, vector<16x32xf32> -> vector<16x32xf32>
    %c0_19 = arith.constant 0 : index
    %c0_20 = arith.constant 0 : index
    %c0_21 = arith.constant 0 : index
    %21 = vector.load %arg10[%c0_19, %c0_20, %c0_21] : memref<1x1x32xf32, #tpu.memory_space<vmem>>, vector<1x1x32xf32>
    %22 = vector.shape_cast %21 : vector<1x1x32xf32> to vector<1x32xf32>
    %23 = vector.broadcast %22 : vector<1x32xf32> to vector<16x32xf32>
    %24 = arith.addf %20, %23 : vector<16x32xf32>
    %c0_22 = arith.constant 0 : index
    %c0_23 = arith.constant 0 : index
    %c0_24 = arith.constant 0 : index
    %c0_25 = arith.constant 0 : index
    %25 = vector.load %arg14[%c0_22, %c0_23, %c0_24, %c0_25] : memref<1x1x16x32xf32, #tpu.memory_space<vmem>>, vector<1x1x16x32xf32>
    %26 = vector.shape_cast %25 : vector<1x1x16x32xf32> to vector<16x32xf32>
    %27 = vector.shape_cast %17 : vector<16x32xf32> to vector<1x1x16x32xf32>
    tpu.vector_store %arg14[%c0_22, %c0_23, %c0_24, %c0_25], %27 {strides = array<i32>} : memref<1x1x16x32xf32, #tpu.memory_space<vmem>>, vector<1x1x16x32xf32>,
    %c0_26 = arith.constant 0 : index
    %c0_27 = arith.constant 0 : index
    %c0_28 = arith.constant 0 : index
    %c0_29 = arith.constant 0 : index
    %28 = vector.load %arg15[%c0_26, %c0_27, %c0_28, %c0_29] : memref<1x1x16x32xf32, #tpu.memory_space<vmem>>, vector<1x1x16x32xf32>
    %29 = vector.shape_cast %28 : vector<1x1x16x32xf32> to vector<16x32xf32>
    %30 = vector.shape_cast %24 : vector<16x32xf32> to vector<1x1x16x32xf32>
    tpu.vector_store %arg15[%c0_26, %c0_27, %c0_28, %c0_29], %30 {strides = array<i32>} : memref<1x1x16x32xf32, #tpu.memory_space<vmem>>, vector<1x1x16x32xf32>,
    %cst_30 = arith.constant dense<0.000000e+00> : vector<16x16xf32>
    %31 = tpu.matmul %10, %17, %cst_30 {dimension_numbers = #tpu.dot_dimension_numbers<[1], [1], [0], [0], [0, 0, 1, 0], [], []>} : vector<16x32xf32>, vector<16x32xf32>, vector<16x16xf32> -> vector<16x16xf32>
    %cst_31 = arith.constant 0.176776692 : f32
    %32 = vector.broadcast %cst_31 : f32 to vector<16x16xf32>
    %33 = arith.mulf %31, %32 : vector<16x16xf32>
    %34 = tpu.iota {dimensions = array<i32: 0>} : vector<16x16xi32>
    %35 = tpu.iota {dimensions = array<i32: 1>} : vector<16x16xi32>
    %36 = arith.cmpi sge, %34, %35 : vector<16x16xi32>
    %cst_32 = arith.constant -1.000000e+30 : f32
    %37 = vector.broadcast %cst_32 : f32 to vector<16x16xf32>
    %38 = arith.select %36, %33, %37 : vector<16x16xi1>, vector<16x16xf32>
    %cst_33 = arith.constant dense<0xFF800000> : vector<16xf32>
    %39 = vector.multi_reduction <maximumf>, %38, %cst_33 [1] : vector<16x16xf32> to vector<16xf32>
    %40 = vector.shape_cast %39 : vector<16xf32> to vector<16x1xf32>
    %41 = vector.broadcast %40 : vector<16x1xf32> to vector<16x16xf32>
    %42 = arith.subf %38, %41 : vector<16x16xf32>
    %43 = math.exp %42 : vector<16x16xf32>
    %cst_34 = arith.constant dense<0.000000e+00> : vector<16xf32>
    %44 = vector.multi_reduction <add>, %43, %cst_34 [1] : vector<16x16xf32> to vector<16xf32>
    %45 = vector.shape_cast %44 : vector<16xf32> to vector<16x1xf32>
    %46 = tpu.reciprocal %45 {approx = true} : vector<16x1xf32> -> vector<16x1xf32>
    %47 = vector.broadcast %46 : vector<16x1xf32> to vector<16x16xf32>
    %48 = arith.mulf %43, %47 : vector<16x16xf32>
    %cst_35 = arith.constant dense<0.000000e+00> : vector<16x32xf32>
    %49 = tpu.matmul %48, %24, %cst_35 {dimension_numbers = #tpu.dot_dimension_numbers<[1], [0], [0], [1], [0, 0, 1, 1], [], []>} : vector<16x16xf32>, vector<16x32xf32>, vector<16x32xf32> -> vector<16x32xf32>
    %c0_36 = arith.constant 0 : index
    %c0_37 = arith.constant 0 : index
    %50 = vector.load %arg17[%c0_36, %c0_37] : memref<16x128xf32, #tpu.memory_space<vmem>>, vector<16x128xf32>
    %c0_38 = arith.constant 0 : index
    %c0_39 = arith.constant 0 : index
    %c0_40 = arith.constant 0 : index
    %51 = vector.load %arg11[%c0_38, %c0_39, %c0_40] : memref<1x32x128xf32, #tpu.memory_space<vmem>>, vector<1x32x128xf32>
    %52 = vector.shape_cast %51 : vector<1x32x128xf32> to vector<32x128xf32>
    %cst_41 = arith.constant dense<0.000000e+00> : vector<16x128xf32>
    %53 = tpu.matmul %49, %52, %cst_41 {dimension_numbers = #tpu.dot_dimension_numbers<[1], [0], [0], [1], [0, 0, 1, 1], [], []>} : vector<16x32xf32>, vector<32x128xf32>, vector<16x128xf32> -> vector<16x128xf32>
    %54 = arith.addf %50, %53 : vector<16x128xf32>
    %c0_42 = arith.constant 0 : index
    %c0_43 = arith.constant 0 : index
    %55 = vector.load %arg17[%c0_42, %c0_43] : memref<16x128xf32, #tpu.memory_space<vmem>>, vector<16x128xf32>
    tpu.vector_store %arg17[%c0_42, %c0_43], %54 {strides = array<i32>} : memref<16x128xf32, #tpu.memory_space<vmem>>, vector<16x128xf32>,
    %c3_i32 = arith.constant 3 : i32
    %56 = arith.cmpi eq, %arg1, %c3_i32 : i32
    %57 = arith.extui %56 : i1 to i32
    %c0_i32_44 = arith.constant 0 : i32
    %58 = arith.cmpi ne, %57, %c0_i32_44 : i32
    scf.if %58 {
      %c0_45 = arith.constant 0 : index
      %c0_46 = arith.constant 0 : index
      %59 = vector.load %arg17[%c0_45, %c0_46] : memref<16x128xf32, #tpu.memory_space<vmem>>, vector<16x128xf32>
      %c0_47 = arith.constant 0 : index
      %c0_48 = arith.constant 0 : index
      %c0_49 = arith.constant 0 : index
      %60 = vector.load %arg13[%c0_47, %c0_48, %c0_49] : memref<1x16x128xf32, #tpu.memory_space<vmem>>, vector<1x16x128xf32>
      %61 = vector.shape_cast %60 : vector<1x16x128xf32> to vector<16x128xf32>
      %62 = vector.shape_cast %59 : vector<16x128xf32> to vector<1x16x128xf32>
      tpu.vector_store %arg13[%c0_47, %c0_48, %c0_49], %62 {strides = array<i32>} : memref<1x16x128xf32, #tpu.memory_space<vmem>>, vector<1x16x128xf32>,
    } else {
    }
    return
  }
  func.func @transform_0(%arg0: i32, %arg1: i32) -> (i32, i32, i32) {
    %c0_i32 = arith.constant 0 : i32
    %c0_i32_0 = arith.constant 0 : i32
    %c0_i32_1 = arith.constant 0 : i32
    return %arg0, %c0_i32, %c0_i32_0 : i32, i32, i32
  }
  func.func @transform_1(%arg0: i32, %arg1: i32) -> (i32, i32) {
    %c0_i32 = arith.constant 0 : i32
    %c0_i32_0 = arith.constant 0 : i32
    %c0_i32_1 = arith.constant 0 : i32
    return %c0_i32, %c0_i32_0 : i32, i32
  }
  func.func @transform_2(%arg0: i32, %arg1: i32) -> (i32, i32) {
    %c0_i32 = arith.constant 0 : i32
    %c0_i32_0 = arith.constant 0 : i32
    %c0_i32_1 = arith.constant 0 : i32
    return %c0_i32, %c0_i32_0 : i32, i32
  }
  func.func @transform_3(%arg0: i32, %arg1: i32) -> (i32, i32, i32) {
    %c0_i32 = arith.constant 0 : i32
    %c0_i32_0 = arith.constant 0 : i32
    %c0_i32_1 = arith.constant 0 : i32
    return %arg1, %c0_i32, %c0_i32_0 : i32, i32, i32
  }
  func.func @transform_4(%arg0: i32, %arg1: i32) -> (i32, i32, i32) {
    %c0_i32 = arith.constant 0 : i32
    %c0_i32_0 = arith.constant 0 : i32
    %c0_i32_1 = arith.constant 0 : i32
    return %arg1, %c0_i32, %c0_i32_0 : i32, i32, i32
  }
  func.func @transform_5(%arg0: i32, %arg1: i32) -> (i32, i32, i32) {
    %c0_i32 = arith.constant 0 : i32
    %c0_i32_0 = arith.constant 0 : i32
    %c0_i32_1 = arith.constant 0 : i32
    return %arg1, %c0_i32, %c0_i32_0 : i32, i32, i32
  }
  func.func @transform_6(%arg0: i32, %arg1: i32) -> (i32, i32, i32) {
    %c0_i32 = arith.constant 0 : i32
    %c0_i32_0 = arith.constant 0 : i32
    %c0_i32_1 = arith.constant 0 : i32
    return %arg1, %c0_i32, %c0_i32_0 : i32, i32, i32
  }
  func.func @transform_7(%arg0: i32, %arg1: i32) -> (i32, i32, i32) {
    %c0_i32 = arith.constant 0 : i32
    %c0_i32_0 = arith.constant 0 : i32
    %c0_i32_1 = arith.constant 0 : i32
    return %arg1, %c0_i32, %c0_i32_0 : i32, i32, i32
  }
  func.func @transform_8(%arg0: i32, %arg1: i32) -> (i32, i32, i32) {
    %c0_i32 = arith.constant 0 : i32
    %c0_i32_0 = arith.constant 0 : i32
    %c0_i32_1 = arith.constant 0 : i32
    return %arg1, %c0_i32, %c0_i32_0 : i32, i32, i32
  }
  func.func @transform_9(%arg0: i32, %arg1: i32) -> (i32, i32, i32) {
    %c0_i32 = arith.constant 0 : i32
    %c0_i32_0 = arith.constant 0 : i32
    %c0_i32_1 = arith.constant 0 : i32
    return %arg1, %c0_i32, %c0_i32_0 : i32, i32, i32
  }
  func.func @transform_10(%arg0: i32, %arg1: i32) -> (i32, i32) {
    %c0_i32 = arith.constant 0 : i32
    %c0_i32_0 = arith.constant 0 : i32
    %c0_i32_1 = arith.constant 0 : i32
    return %c0_i32, %c0_i32_0 : i32, i32
  }
  func.func @transform_11(%arg0: i32, %arg1: i32) -> (i32, i32, i32) {
    %c0_i32 = arith.constant 0 : i32
    %c0_i32_0 = arith.constant 0 : i32
    %c0_i32_1 = arith.constant 0 : i32
    return %arg0, %c0_i32, %c0_i32_0 : i32, i32, i32
  }
  func.func @transform_12(%arg0: i32, %arg1: i32) -> (i32, i32, i32, i32) {
    %c0_i32 = arith.constant 0 : i32
    %c0_i32_0 = arith.constant 0 : i32
    %c0_i32_1 = arith.constant 0 : i32
    return %arg0, %arg1, %c0_i32, %c0_i32_0 : i32, i32, i32, i32
  }
  func.func @transform_13(%arg0: i32, %arg1: i32) -> (i32, i32, i32, i32) {
    %c0_i32 = arith.constant 0 : i32
    %c0_i32_0 = arith.constant 0 : i32
    %c0_i32_1 = arith.constant 0 : i32
    return %arg0, %arg1, %c0_i32, %c0_i32_0 : i32, i32, i32, i32
  }
}

</mosaic_0001>

<bundles_post_ra>
// kernel: tpu_custom_call.1
= control target key start
LH: loop header
LB: loop body
LE: loop exit
PB: predicated region body
PF: predicated region fallthrough
CT: control target
= control target key end

     0   :  { %s2577_s0 = inlined_call_operand.vmem [shape: f32[2,16,128], index: 0, kind: input, shape index: {}]   ;;  %s2578_s1 = inlined_call_operand.vmem [shape: f32[1,128], index: 1, kind: input, shape index: {}]   ;;  %s2579_s2 = inlined_call_operand.vmem [shape: f32[1,128], index: 2, kind: input, shape index: {}]   ;;  %s2580_s3 = inlined_call_operand.vmem [shape: f32[4,128,32], index: 3, kind: input, shape index: {}]   ;;  %s2581_s4 = inlined_call_operand.vmem [shape: f32[4,128,32], index: 4, kind: input, shape index: {}]   ;;  %s2582_s5 = inlined_call_operand.vmem [shape: f32[4,128,32], index: 5, kind: input, shape index: {}]   ;;  %s2583_s6 = inlined_call_operand.vmem [shape: f32[4,1,32], index: 6, kind: input, shape index: {}]   ;;  %s2584_s7 = inlined_call_operand.vmem [shape: f32[4,1,32], index: 7, kind: input, shape index: {}]   ;;  %s2585_s8 = inlined_call_operand.vmem [shape: f32[4,1,32], index: 8, kind: input, shape index: {}]   ;;  %s2586_s9 = inlined_call_operand.vmem [shape: f32[4,32,128], index: 9, kind: input, shape index: {}]   ;;  %s2587_s10 = inlined_call_operand.vmem [shape: f32[1,128], index: 10, kind: input, shape index: {}]   ;;  %s2588_s11 = inlined_call_operand.hbm [shape: f32[2,16,128], index: 11, kind: output, shape index: {0}]   ;;  %s2589_s12 = inlined_call_operand.hbm [shape: f32[2,4,16,32], index: 12, kind: output, shape index: {1}]   ;;  %s2590_s13 = inlined_call_operand.hbm [shape: f32[2,4,16,32], index: 13, kind: output, shape index: {2}]  }
   0x1   :  { %2613 = sst [smem:[#allocation27_spill]] %s2577_s0 }
   0x2   :  { %2614 = sst [smem:[#allocation28_spill]] %s2578_s1 }
   0x3   :  { %2615 = sst [smem:[#allocation29_spill]] %s2579_s2 }
   0x4   :  { %2616 = sst [smem:[#allocation30_spill]] %s2580_s3 }
   0x5   :  { %2617 = sst [smem:[#allocation31_spill]] %s2581_s4 }
   0x6   :  { %2618 = sst [smem:[#allocation32_spill]] %s2582_s5 }
   0x7   :  { %2619 = sst [smem:[#allocation33_spill]] %s2583_s6 }
   0x8   :  { %2620 = sst [smem:[#allocation34_spill]] %s2588_s11 }
   0x9   :  { %2621 = sst [smem:[#allocation35_spill]] %s2589_s12 }
   0xa   :  { %2622 = sst [smem:[#allocation36_spill]] %s2590_s13 }
   0xb   :  { %19 = vsyncpa [#allocation5], 0 }
   0xc   :  { %21 = vsyncpa [#allocation5 + $0x1], 0 }
   0xd   :  { %22 = vsyncpa [#allocation7], 0 }
   0xe   :  { %24 = vsyncpa [#allocation7 + $0x1], 0  ;;  %s2151_s25 = smov 0   ;;  %s2153_s26 = smov 0  }
   0xf   :  { %s2155_s27 = smov 0   ;;  %s2157_s28 = smov 0  }
  0x10   :  { %s2159_s29 = smov 0   ;;  %s2161_s30 = smov 0  }
  0x11   :  { %s2163_s14 = smov 0   ;;  %s2165_s15 = smov 0  }
  0x12   :  { %s2167_s16 = smov 0   ;;  %s2169_s17 = smov 0  }
  0x13   :  { %s2171_s18 = smov 0  }
  0x14 LB: > { %2623 = sst [smem:[#allocation11_spill]] %s2038_s26  ;;  %s2592_s19 = sadd.s32 4294967295, %s2074_s18   ;;  %s2074_s18 = sphi %s2171_s18, %s30_s18   ;;  %s2070_s17 = sphi %s2169_s17, %s2678_s17   ;;  %s2066_s16 = sphi %s2167_s16, %s2677_s16   ;;  %s2062_s15 = sphi %s2165_s15, %s2676_s15   ;;  %s2058_s14 = sphi %s2163_s14, %s2675_s14   ;;  %s2054_s30 = sphi %s2161_s30, %s2674_s30   ;;  %s2050_s29 = sphi %s2159_s29, %s2673_s29   ;;  %s2046_s28 = sphi %s2157_s28, %s2672_s28   ;;  %s2042_s27 = sphi %s2155_s27, %s2671_s27   ;;  %s2038_s26 = sphi %s2153_s26, %s2670_s26   ;;  %s2034_s25 = sphi %s2151_s25, %s2669_s25  }
  0x15   : > { %2624 = sst [smem:[#allocation12_spill]] %s2042_s27  ;;  %s39_s21 = sadd.s32 1, %s2066_s16 }
  0x16   : > { %2625 = sst [smem:[#allocation13_spill]] %s2046_s28  ;;  %s42_s22 = sadd.s32 1, %s2070_s17 }
  0x17   : > { %2626 = sst [smem:[#allocation14_spill]] %s2050_s29  ;;  %p40_p0 = scmp.ge.s32.totalorder %s39_s21, 4 }
  0x18   : > { %2627 = sst [smem:[#allocation15_spill]] %s2054_s30  ;;  %s320_s23 = sadd.s32 1, %s2054_s30 }
  0x19   : > { %2628 = sst [smem:[#allocation16_spill]] %s2062_s15  ;;  %p330_p1 = scmp.ne.s32.totalorder %s2054_s30, %s2050_s29 }
  0x1a   : > { %2629 = sst [smem:[#allocation17_spill]] %s2066_s16  ;;  %p2215_p2 = scmp.eq.s32.totalorder %s2592_s19, 7 }
  0x1b   : > { %2630 = sst [smem:[#allocation18_spill]] %s2070_s17  ;;  %s2680_s21 = smov (%p40_p0, %s39_s21), 0 }
  0x1c   : > { %2632 = sst [smem:[#allocation19_spill]] %s2680_s21  ;;  %s2682_s22 = smov (!%p40_p0, %s42_s22), %s2070_s17 }
  0x1d   : > { %p2224_p3 = por %p2215_p2, %p330_p1  ;;  %p336_p4 = scmp.ne.s32.totalorder %s2050_s29, %s2046_s28 }
  0x1e   : > { %p44_p5 = scmp.ge.s32.totalorder %s2682_s22, 2  ;;  %s2635_s11 = sadd.s32 4294967294, %s2074_s18  }
  0x1f   : > { %s2633_s20 = scalar_select %p2224_p3, 1, 0 }
  0x20   : > { %p2232_p6 = scmp.eq.s32.totalorder %s2635_s11, 7  ;;  %s344_s13 = ssub.s32 %s2066_s16, %s2680_s21 }
  0x21   : > { %2634 = sst [smem:[#allocation20_spill]] %s2633_s20  ;;  %s348_s12 = sadd.s32 1, %s2042_s27 }
  0x22   : > { %s2684_s22 = smov (%p44_p5, %s2682_s22), 0  ;;  %p2243_p7 = por %p2232_p6, %p336_p4 }
  0x23   : > { %2637 = sst [smem:[#allocation21_spill]] %s2684_s22  ;;  %p358_p8 = scmp.ne.s32.totalorder %s2042_s27, %s2038_s26 }
  0x24   : > { %s2638_s20 = scalar_select %p2243_p7, 1, 0 }
  0x25   : > { %s317_s28 = ssub.s32 %s2070_s17, %s2684_s22  ;;  %p364_p9 = scmp.ne.s32.totalorder %s2038_s26, %s2034_s25 }
  0x26   : > { %2639 = sst [smem:[#allocation22_spill]] %s2638_s20  ;;  %p318_p10 = scmp.eq.s32.totalorder %s317_s28, 0 }
  0x27   : > { %s345_s11 = sor.u32 %s344_s13, %s317_s28  ;;  %p2255_p12 = por %p358_p8, %p2215_p2 }
  0x28   : > { %p346_p11 = scmp.eq.s32.totalorder %s345_s11, 0  ;;  %p2267_p13 = por %p364_p9, %p2232_p6 }
  0x29   : > { %s2640_s2 = scalar_select %p2255_p12, 1, 0 }
  0x2a   : > { %s2260_s21 = scalar_select %p318_p10, %s2054_s30, %s320_s23  }
  0x2b   : > { %2641 = sst [smem:[#allocation23_spill]] %s2640_s2  ;;  %p1536_p0 = scmp.ge.s32.totalorder %s2074_s18, 1 }
  0x2c   : > { %2642 = sst [smem:[#allocation24_spill]] %s2260_s21  ;;  %p478_p1 = scmp.lt.s32.totalorder %s2074_s18, 9 }
  0x2d   : > { %s2263_s16 = scalar_select %p346_p11, %s2042_s27, %s348_s12  }
  0x2e   : > { %s2644_s1 = scalar_select %p2267_p13, 1, 0 }
  0x2f   : > { %2643 = sst [smem:[#allocation25_spill]] %s2263_s16  ;;  %p479_p4 = pnand %p1536_p0, %p478_p1 }
  0x30   : > { %2645 = sst [smem:[#allocation26_spill]] %s2644_s1  ;;  %s2603_s13 = sand.u32 (!%p479_p4), 1, %s2050_s29  }
  0x31   : > { %482 = sbr.rel (%p479_p4) target bundleno = 1610 (0x64a), region = 64  ;;  %s551_s25 = sand.u32 (!%p479_p4), 1, %s2038_s26  }
  0x32   : > { %s1537_s12 = sshll.u32 (!%p479_p4), %s2603_s13, 4  ;;  %s1538_s28 = sshll.u32 (!%p479_p4), %s551_s25, 4 }
  0x33   : > { %p561_p2 = scmp.lt.s32.totalorder (!%p479_p4), %s2062_s15, 1  ;;  %p566_p5 = scmp.lt.s32.totalorder (!%p479_p4), %s2058_s14, 3 }
  0x34   : > { %s2646_s0 = sld [smem:[#allocation27_spill]] (!%p479_p4)  ;;  %s2320_s1 = scalar_lea.vmem (!%p479_p4), [#allocation4], %s1537_s12 }
  0x35   : > { %s2647_s3 = sld [smem:[#allocation30_spill]] (!%p479_p4)  ;;  %s2322_s20 = scalar_lea.vmem (!%p479_p4), [#allocation6], %s1538_s28 }
  0x36   : > { %s562_s19 = scalar_select %p561_p2, %s2062_s15, 1 }
  0x37   : > { %s2281_s23 = scalar_select %p566_p5, %s2058_s14, 3 }
  0x38   : > { %s1579_s24 = sshll.u32 %s562_s19, 4  ;;  %s2648_s4 = sld [smem:[#allocation31_spill]] }
  0x39   : > { %s1580_s21 = sshll.u32 %s2281_s23, 7  ;;  %s2649_s5 = sld [smem:[#allocation32_spill]] }
  0x3a   : > { %s565_s17 = scalar_lea.vmem %s2646_s0, %s1579_s24  ;;  %s2650_s6 = sld [smem:[#allocation33_spill]] }
  0x3b   : > { %s2290_s25 = scalar_lea.vmem %s2647_s3, %s1580_s21  ;;  %s586_s30 = scalar_lea.vmem %s2584_s7, %s2281_s23 }
  0x3c   : > { %s589_s3 = scalar_lea.vmem %s2585_s8, %s2281_s23  ;;  %s1583_s27 = sshll.u32 %s2281_s23, 5 }
  0x3d   : > { %s2318_s15 = scalar_lea.vmem %s2586_s9, %s1583_s27  ;;  %s2324_s2 = scalar_lea.vmem [#allocation8], %s1538_s28 }
  0x3e   : > { %s2295_s26 = scalar_lea.vmem %s2648_s4, %s1580_s21  ;;  %p1550_p6 = scmp.ne.s32.totalorder %s2058_s14, 0 }
  0x3f   : > { %s2300_s29 = scalar_lea.vmem %s2649_s5, %s1580_s21  ;;  %s2652_s24 = sld [smem:[#allocation29_spill]] (!%p1550_p6) }
  0x40   : > { %s583_s22 = scalar_lea.vmem %s2650_s6, %s2281_s23  ;;  %598 = sbr.rel (%p1550_p6) target bundleno = 381 (0x17d), region = 68 }
  0x45   : > { %v599_v0 = vld [vmem:[%s565_s17] sm:$0xff]  ;;  %v600_v2 = vld [vmem:[%s565_s17 + $0x8] sm:$0xff]  ;;  %s2651_s17 = sld [smem:[#allocation28_spill]] }
  0x46   : > { %v1553_v1 = vld [vmem:[%s2587_s10] ss:$0 sm:$0xff]  ;;  %603 = vadd.xlane.f32.xlu0 %v599_v0 }
  0x47   : > { %v651_v3 = vadd.f32 %v1553_v1, %v599_v0  ;;  %v652_v4 = vadd.f32 %v1553_v1, %v600_v2  ;;  %v1552_v22 = vld [vmem:[%s2652_s24] ss:$0 sm:$0xff] }
  0x49   : > { %653 = vst [vmem:[#allocation3 + $0x8] sm:$0xff] %v651_v3  ;;  %654 = vst [vmem:[#allocation3] sm:$0xff] %v652_v4 }
  0x4a   : > { %605 = vadd.xlane.f32.xlu0 %v600_v2 }
  0x4b   : > { %v1551_v20 = vld [vmem:[%s2651_s17] ss:$0 sm:$0xff] }
  0xcf   : > { %v604_v5 = vpop.xlane.xlu0 %603 }
  0xd0   : > { %v608_v6 = vmul.f32 0.0078125, %v604_v5 }
  0xd2   : > { %v610_v7 = vsub.f32 %v599_v0, %v608_v6 }
  0xd3   : > { %v606_v8 = vpop.xlane.xlu0 %605 }
  0xd4   : > { %v609_v9 = vmul.f32 0.0078125, %v606_v8  ;;  %v612_v10 = vmul.f32 %v610_v7, %v610_v7 }
  0xd6   : > { %v611_v11 = vsub.f32 %v600_v2, %v609_v9  ;;  %614 = vadd.xlane.f32.xlu1 %v612_v10 }
  0xd8   : > { %v613_v12 = vmul.f32 %v611_v11, %v611_v11 }
  0xda   : > { %616 = vadd.xlane.f32.xlu1 %v613_v12 }
 0x15f   : > { %v615_v13 = vpop.xlane.xlu1 %614 }
 0x160   : > { %v618_v14 = vmul.f32 0.0078125, %v615_v13 }
 0x162   : > { %v620_v15 = vadd.f32 1e-05, %v618_v14 }
 0x163   : > { %v617_v16 = vpop.xlane.xlu1 %616 }
 0x164   : > { %1890 = vrsqrt.f32 %v620_v15  ;;  %v619_v17 = vmul.f32 0.0078125, %v617_v16 }
 0x166   : > { %v621_v18 = vadd.f32 1e-05, %v619_v17 }
 0x168   : > { %1892 = vrsqrt.f32 %v621_v18 }
 0x171   : > { %v1891_v19 = vpop.eup %1890 }
 0x172   : > { %v624_v21 = vmul.f32 %v1891_v19, %v610_v7 }
 0x174   : > { %v632_v23 = vmul.f32 %v1551_v20, %v624_v21 }
 0x175   : > { %v1893_v24 = vpop.eup %1892 }
 0x176   : > { %v640_v25 = vadd.f32 %v1552_v22, %v632_v23  ;;  %v625_v26 = vmul.f32 %v1893_v24, %v611_v11 }
 0x178   : > { %642 = vst [vmem:[#allocation2] sm:$0xff] %v640_v25  ;;  %v633_v27 = vmul.f32 %v1551_v20, %v625_v26 }
 0x17a   : > { %v641_v28 = vadd.f32 %v1552_v22, %v633_v27 }
 0x17c   : > { %643 = vst [vmem:[#allocation2 + $0x8] sm:$0xff] %v641_v28 }
 0x17d PF: > { %v770_v29 = vld [vmem:[%s2295_s26 + $0x78] sm:$0xff]  ;;  %v769_v30 = vld [vmem:[%s2295_s26 + $0x70] sm:$0xff]  ;;  %v768_v33 = vld [vmem:[%s2295_s26 + $0x68] sm:$0xff]  ;;  %vm951_vm0 = vcmask 261120   ;;  %v1045_v25 = vlaneseq  ;;  %vm1054_vm3 = vcmask 130048   ;;  %p1565_p8 = scmp.ne.s32.totalorder %s2058_s14, 3 }
 0x17e   : > { %v672_v31 = vld [vmem:[%s2290_s25 + $0x78] sm:$0xff]  ;;  %1688 = vmatprep.subr.mxu1 %v770_v29  ;;  %v671_v32 = vld [vmem:[%s2290_s25 + $0x70] sm:$0xff]  ;;  %v670_v34 = vld [vmem:[%s2290_s25 + $0x68] sm:$0xff] }
 0x17f   : > { %1653 = vmatprep.subr.mxu0 %v672_v31  ;;  %1689 = vmatpush3.msra.mxu1 %v770_v29  ;;  %v767_v35 = vld [vmem:[%s2295_s26 + $0x60] sm:$0xff]  ;;  %v766_v37 = vld [vmem:[%s2295_s26 + $0x58] sm:$0xff]  ;;  %v765_v39 = vld [vmem:[%s2295_s26 + $0x50] sm:$0xff]  ;;  %v1046_v26 = vshrl.u32 %v1045_v25, 7  ;;  %v1049_v28 = vand.u32 127, %v1045_v25 }
 0x180   : > { %1654 = vmatpush3.msra.mxu0 %v672_v31  ;;  %1690 = vmatprep.subr.mxu1 %v769_v30  ;;  %v669_v36 = vld [vmem:[%s2290_s25 + $0x60] sm:$0xff]  ;;  %v668_v38 = vld [vmem:[%s2290_s25 + $0x58] sm:$0xff]  ;;  %v667_v40 = vld [vmem:[%s2290_s25 + $0x50] sm:$0xff] }
 0x181   : > { %1655 = vmatprep.subr.mxu0 %v671_v32  ;;  %1691 = vmatpush3.msra.mxu1 %v769_v30  ;;  %v764_v41 = vld [vmem:[%s2295_s26 + $0x48] sm:$0xff]  ;;  %v763_v43 = vld [vmem:[%s2295_s26 + $0x40] sm:$0xff]  ;;  %v762_v45 = vld [vmem:[%s2295_s26 + $0x38] sm:$0xff]  ;;  %v1047_v29 = vadd.s32 8, %v1046_v26  ;;  %vm1050_vm1 = vcmp.ge.s32.totalorder %v1046_v26, %v1049_v28 }
 0x182   : > { %1656 = vmatpush3.msra.mxu0 %v671_v32  ;;  %1692 = vmatprep.subr.mxu1 %v768_v33  ;;  %v666_v42 = vld [vmem:[%s2290_s25 + $0x48] sm:$0xff]  ;;  %v665_v44 = vld [vmem:[%s2290_s25 + $0x40] sm:$0xff]  ;;  %v664_v46 = vld [vmem:[%s2290_s25 + $0x38] sm:$0xff] }
 0x183   : > { %1657 = vmatprep.subr.mxu0 %v670_v34  ;;  %1693 = vmatpush3.msra.mxu1 %v768_v33  ;;  %v761_v47 = vld [vmem:[%s2295_s26 + $0x30] sm:$0xff]  ;;  %v760_v49 = vld [vmem:[%s2295_s26 + $0x28] sm:$0xff]  ;;  %v759_v51 = vld [vmem:[%s2295_s26 + $0x20] sm:$0xff]  ;;  %vm1051_vm2 = vcmp.ge.s32.totalorder %v1047_v29, %v1049_v28 }
 0x184   : > { %1658 = vmatpush3.msra.mxu0 %v670_v34  ;;  %1694 = vmatprep.subr.mxu1 %v767_v35  ;;  %v663_v48 = vld [vmem:[%s2290_s25 + $0x30] sm:$0xff]  ;;  %v662_v50 = vld [vmem:[%s2290_s25 + $0x28] sm:$0xff]  ;;  %v661_v52 = vld [vmem:[%s2290_s25 + $0x20] sm:$0xff] }
 0x185   : > { %1659 = vmatprep.subr.mxu0 %v669_v36  ;;  %1695 = vmatpush3.msra.mxu1 %v767_v35  ;;  %v758_v53 = vld [vmem:[%s2295_s26 + $0x18] sm:$0xff]  ;;  %v757_v55 = vld [vmem:[%s2295_s26 + $0x10] sm:$0xff]  ;;  %v756_v57 = vld [vmem:[%s2295_s26 + $0x8] sm:$0xff] }
 0x186   : > { %1660 = vmatpush3.msra.mxu0 %v669_v36  ;;  %1696 = vmatprep.subr.mxu1 %v766_v37  ;;  %v660_v54 = vld [vmem:[%s2290_s25 + $0x18] sm:$0xff]  ;;  %v659_v56 = vld [vmem:[%s2290_s25 + $0x10] sm:$0xff]  ;;  %v658_v58 = vld [vmem:[%s2290_s25 + $0x8] sm:$0xff] }
 0x187   : > { %1661 = vmatprep.subr.mxu0 %v668_v38  ;;  %1697 = vmatpush3.msra.mxu1 %v766_v37  ;;  %v655_v59 = vld [vmem:[#allocation2] sm:$0xff]  ;;  %v2368_v62 = vld [vmem:[#allocation2 + $0x8] sm:$0xff]  ;;  %v868_v9 = vld [vmem:[%s2300_s29 + $0x78] sm:$0xff] }
 0x188   : > { %1662 = vmatpush3.msra.mxu0 %v668_v38  ;;  %1698 = vmatprep.subr.mxu1 %v765_v39  ;;  %v755_v60 = vld [vmem:[%s2295_s26] sm:$0xff]  ;;  %v867_v10 = vld [vmem:[%s2300_s29 + $0x70] sm:$0xff]  ;;  %v866_v11 = vld [vmem:[%s2300_s29 + $0x68] sm:$0xff] }
 0x189   : > { %1663 = vmatprep.subr.mxu0 %v667_v40  ;;  %1699 = vmatpush3.msra.mxu1 %v765_v39  ;;  %v657_v61 = vld [vmem:[%s2290_s25] sm:$0xff]  ;;  %v864_v13 = vld [vmem:[%s2300_s29 + $0x58] sm:$0xff]  ;;  %v863_v14 = vld [vmem:[%s2300_s29 + $0x50] sm:$0xff] }
 0x18a   : > { %1664 = vmatpush3.msra.mxu0 %v667_v40  ;;  %1700 = vmatprep.subr.mxu1 %v764_v41  ;;  %v1555_v63 = vld [vmem:[%s586_s30] ss:$0 sm:$0xff]  ;;  %v862_v15 = vld [vmem:[%s2300_s29 + $0x48] sm:$0xff]  ;;  %v860_v17 = vld [vmem:[%s2300_s29 + $0x38] sm:$0xff] }
 0x18b   : > { %1665 = vmatprep.subr.mxu0 %v666_v42  ;;  %1701 = vmatpush3.msra.mxu1 %v764_v41  ;;  %v1554_v4 = vld [vmem:[%s583_s22] ss:$0 sm:$0xff]  ;;  %v859_v18 = vld [vmem:[%s2300_s29 + $0x30] sm:$0xff]  ;;  %v858_v19 = vld [vmem:[%s2300_s29 + $0x28] sm:$0xff] }
 0x18c   : > { %1666 = vmatpush3.msra.mxu0 %v666_v42  ;;  %1702 = vmatprep.subr.mxu1 %v763_v43  ;;  %v865_v12 = vld [vmem:[%s2300_s29 + $0x60] sm:$0xff]  ;;  %v856_v21 = vld [vmem:[%s2300_s29 + $0x18] sm:$0xff]  ;;  %v855_v22 = vld [vmem:[%s2300_s29 + $0x10] sm:$0xff] }
 0x18d   : > { %1667 = vmatprep.subr.mxu0 %v665_v44  ;;  %1703 = vmatpush3.msra.mxu1 %v763_v43  ;;  %v861_v16 = vld [vmem:[%s2300_s29 + $0x40] sm:$0xff]  ;;  %v854_v23 = vld [vmem:[%s2300_s29 + $0x8] sm:$0xff] }
 0x18e   : > { %1668 = vmatpush3.msra.mxu0 %v665_v44  ;;  %1704 = vmatprep.subr.mxu1 %v762_v45  ;;  %v857_v20 = vld [vmem:[%s2300_s29 + $0x20] sm:$0xff] }
 0x18f   : > { %1669 = vmatprep.subr.mxu0 %v664_v46  ;;  %1705 = vmatpush3.msra.mxu1 %v762_v45  ;;  %v853_v24 = vld [vmem:[%s2300_s29] sm:$0xff] }
 0x190   : > { %1670 = vmatpush3.msra.mxu0 %v664_v46  ;;  %1706 = vmatprep.subr.mxu1 %v761_v47 }
 0x191   : > { %1671 = vmatprep.subr.mxu0 %v663_v48  ;;  %1707 = vmatpush3.msra.mxu1 %v761_v47 }
 0x192   : > { %1672 = vmatpush3.msra.mxu0 %v663_v48  ;;  %1708 = vmatprep.subr.mxu1 %v760_v49  ;;  %v1556_v48 = vld [vmem:[%s589_s3] ss:$0 sm:$0xff] }
 0x193   : > { %1673 = vmatprep.subr.mxu0 %v662_v50  ;;  %1709 = vmatpush3.msra.mxu1 %v760_v49 }
 0x194   : > { %1674 = vmatpush3.msra.mxu0 %v662_v50  ;;  %1710 = vmatprep.subr.mxu1 %v759_v51 }
 0x195   : > { %1675 = vmatprep.subr.mxu0 %v661_v52  ;;  %1711 = vmatpush3.msra.mxu1 %v759_v51 }
 0x196   : > { %1676 = vmatpush3.msra.mxu0 %v661_v52  ;;  %1712 = vmatprep.subr.mxu1 %v758_v53  ;;  %v1163_v52 = vld [vmem:[%s2318_s15 + $0x18] sm:$0xff] }
 0x197   : > { %1677 = vmatprep.subr.mxu0 %v660_v54  ;;  %1713 = vmatpush3.msra.mxu1 %v758_v53 }
 0x198   : > { %1678 = vmatpush3.msra.mxu0 %v660_v54  ;;  %1714 = vmatprep.subr.mxu1 %v757_v55 }
 0x199   : > { %1679 = vmatprep.subr.mxu0 %v659_v56  ;;  %1715 = vmatpush3.msra.mxu1 %v757_v55 }
 0x19a   : > { %1680 = vmatpush3.msra.mxu0 %v659_v56  ;;  %1716 = vmatprep.subr.mxu1 %v756_v57 }
 0x19b   : > { %1681 = vmatprep.subr.mxu0 %v658_v58  ;;  %1717 = vmatpush3.msra.mxu1 %v756_v57 }
 0x19c   : > { %1720 = vmatprep.mubr.f32.mxu1 %v655_v59  ;;  %1718 = vmatprep.subr.mxu1 %v755_v60 }
 0x19d   : > { %1682 = vmatpush3.msra.mxu0 %v658_v58  ;;  %1719 = vmatpush3.msra.mxu1 %v755_v60  ;;  %v1161_v60 = vld [vmem:[%s2318_s15 + $0x8] sm:$0xff] }
 0x19e   : > { %1683 = vmatprep.subr.mxu0 %v657_v61  ;;  %1721 = vmatmul.mubr.f32.vlgmr.msra.gmra.mxu1 %v2368_v62 }
 0x19f   : > { %1684 = vmatpush3.msra.mxu0 %v657_v61  ;;  %1685 = vmatprep.mubr.f32.mxu0 %v655_v59  ;;  %v1160_v61 = vld [vmem:[%s2318_s15] sm:$0xff] }
 0x1a0   : > { %1686 = vmatmul.mubr.f32.vlgmr.msra.gmra.mxu0 %v2368_v62  ;;  %1723 = vmatprep.subr.mxu0 %v868_v9 }
 0x1a1   : > { %1755 = vmatprep.mubr.f32.mxu0 %v655_v59  ;;  %1724 = vmatpush3.msra.mxu0 %v868_v9  ;;  %v1162_v59 = vld [vmem:[%s2318_s15 + $0x10] sm:$0xff] }
 0x1a2   : > { %1725 = vmatprep.subr.mxu0 %v867_v10 }
 0x1a3   : > { %1726 = vmatpush3.msra.mxu0 %v867_v10 }
 0x1a4   : > { %1727 = vmatprep.subr.mxu0 %v866_v11 }
 0x1a5   : > { %1728 = vmatpush3.msra.mxu0 %v866_v11 }
 0x1a6   : > { %1729 = vmatprep.subr.mxu0 %v865_v12 }
 0x1a7   : > { %1730 = vmatpush3.msra.mxu0 %v865_v12 }
 0x1a8   : > { %1731 = vmatprep.subr.mxu0 %v864_v13 }
 0x1a9   : > { %1732 = vmatpush3.msra.mxu0 %v864_v13 }
 0x1aa   : > { %1733 = vmatprep.subr.mxu0 %v863_v14 }
 0x1ab   : > { %1734 = vmatpush3.msra.mxu0 %v863_v14 }
 0x1ac   : > { %1735 = vmatprep.subr.mxu0 %v862_v15 }
 0x1ad   : > { %1736 = vmatpush3.msra.mxu0 %v862_v15 }
 0x1ae   : > { %1737 = vmatprep.subr.mxu0 %v861_v16 }
 0x1af   : > { %1738 = vmatpush3.msra.mxu0 %v861_v16 }
 0x1b0   : > { %1739 = vmatprep.subr.mxu0 %v860_v17 }
 0x1b1   : > { %1740 = vmatpush3.msra.mxu0 %v860_v17 }
 0x1b2   : > { %1741 = vmatprep.subr.mxu0 %v859_v18 }
 0x1b3   : > { %1742 = vmatpush3.msra.mxu0 %v859_v18 }
 0x1b4   : > { %1743 = vmatprep.subr.mxu0 %v858_v19 }
 0x1b5   : > { %1744 = vmatpush3.msra.mxu0 %v858_v19 }
 0x1b6   : > { %1745 = vmatprep.subr.mxu0 %v857_v20 }
 0x1b7   : > { %1746 = vmatpush3.msra.mxu0 %v857_v20 }
 0x1b8   : > { %1747 = vmatprep.subr.mxu0 %v856_v21 }
 0x1b9   : > { %1748 = vmatpush3.msra.mxu0 %v856_v21 }
 0x1ba   : > { %1749 = vmatprep.subr.mxu0 %v855_v22 }
 0x1bb   : > { %1750 = vmatpush3.msra.mxu0 %v855_v22 }
 0x1bc   : > { %1751 = vmatprep.subr.mxu0 %v854_v23 }
 0x1bd   : > { %1752 = vmatpush3.msra.mxu0 %v854_v23 }
 0x1be   : > { %1753 = vmatprep.subr.mxu0 %v853_v24 }
 0x1bf   : > { %1754 = vmatpush3.msra.mxu0 %v853_v24 }
 0x1c0   : > { %1756 = vmatmul.mubr.f32.vlgmr.msra.gmra.mxu0 %v2368_v62 }
 0x25e   : > { %v1722_v0 = vpop.f32.mrf.mxu1 }
 0x25f   : > { %v850_v1 = vadd.f32 %v1722_v0, %v1555_v63  ;;  %v1159_v0 = vld [vmem:[#allocation3] sm:$0xff] }
 0x260   : > { %v844_v2 = vpop.f32.mrf.mxu1  ;;  %v1687_v3 = vpop.f32.mrf.mxu0 }
 0x261   : > { %953 = vst.msk [vmem:[%s2322_s20 + $0x8] sm:$0xff] %vm951_vm0, %v850_v1  ;;  %v845_v5 = vadd.f32 %v1555_v63, %v844_v2  ;;  %1758 = vmatprep.subr.msk.mxu1 %vm951_vm0, %v850_v1  ;;  %v752_v8 = vadd.f32 %v1687_v3, %v1554_v4  ;;  %v1158_v2 = vld [vmem:[#allocation3 + $0x8] sm:$0xff] }
 0x262   : > { %1759 = vmatpush3.xpose.msk.msra.mxu1 %vm951_vm0, %v850_v1  ;;  %v746_v6 = vpop.f32.mrf.mxu0 }
 0x263   : > { %952 = vst.msk [vmem:[%s2322_s20] sm:$0xff] %vm951_vm0, %v845_v5  ;;  %v747_v7 = vadd.f32 %v1554_v4, %v746_v6  ;;  %1760 = vmatprep.subr.msk.mxu1 %vm951_vm0, %v845_v5 }
 0x265   : > { %1762 = vmatprep.mubr.msk.f32.mxu1 %vm951_vm0, %v747_v7 }
 0x266   : > { %1761 = vmatpush3.xpose.msk.msra.mxu1 %vm951_vm0, %v845_v5 }
 0x269   : > { %1763 = vmatmul.mubr.msk.f32.vlgmr.msra.gmra.mxu1 %vm951_vm0, %v752_v8 }
 0x280   : > { %v1757_v47 = vpop.f32.mrf.mxu0 }
 0x281   : > { %v948_v49 = vadd.f32 %v1757_v47, %v1556_v48 }
 0x282   : > { %v942_v50 = vpop.f32.mrf.mxu0 }
 0x283   : > { %955 = vst.msk [vmem:[%s2324_s2 + $0x8] sm:$0xff] %vm951_vm0, %v948_v49  ;;  %v943_v51 = vadd.f32 %v1556_v48, %v942_v50  ;;  %1765 = vmatprep.subr.mxu1 %v948_v49 }
 0x284   : > { %1766 = vmatpush3.msra.mxu1 %v948_v49 }
 0x285   : > { %954 = vst.msk [vmem:[%s2324_s2] sm:$0xff] %vm951_vm0, %v943_v51  ;;  %1767 = vmatprep.subr.mxu1 %v943_v51 }
 0x286   : > { %1768 = vmatpush3.msra.mxu1 %v943_v51 }
 0x287   : > { %1772 = vmatprep.subr.mxu1 %v1163_v52 }
 0x329   : > { %v1764_v27 = vpop.f32.mrf.mxu1 }
 0x32a   : > { %v1044_v31 = vmul.f32 0.17677669, %v1764_v27 }
 0x32b   : > { %v1034_v30 = vpop.f32.mrf.mxu1 }
 0x32c   : > { %v1043_v32 = vmul.f32 0.17677669, %v1034_v30  ;;  %v1053_v35 = vsel %vm1051_vm2, %v1044_v31, -1e+30 }
 0x32d   : > { %v1058_v36 = vsel %vm1054_vm3, %v1053_v35, -inf }
 0x32e   : > { %v1052_v33 = vsel %vm1050_vm1, %v1043_v32, -1e+30 }
 0x32f   : > { %v1055_v34 = vsel %vm1054_vm3, %v1052_v33, -inf }
 0x330   : > { %1056 = vmax.xlane.f32.xlu0 %v1055_v34 }
 0x334   : > { %1059 = vmax.xlane.f32.xlu0 %v1058_v36 }
 0x3b9   : > { %v1057_v37 = vpop.xlane.xlu0 %1056 }
 0x3ba   : > { %v1061_v38 = vsub.f32 %v1052_v33, %v1057_v37 }
 0x3bc   : > { %v1063_v39 = vmul.f32 1.442695, %v1061_v38 }
 0x3bd   : > { %v1060_v40 = vpop.xlane.xlu0 %1059 }
 0x3be   : > { %1894 = vpow2.f32 %v1063_v39  ;;  %v1062_v41 = vsub.f32 %v1053_v35, %v1060_v40 }
 0x3c0   : > { %v1065_v42 = vmul.f32 1.442695, %v1062_v41 }
 0x3c2   : > { %1896 = vpow2.f32 %v1065_v42 }
 0x3cb   : > { %v1895_v43 = vpop.eup %1894 }
 0x3cc   : > { %v1067_v44 = vsel %vm1054_vm3, %v1895_v43, 0.0 }
 0x3cd   : > { %1068 = vadd.xlane.f32.xlu1 %v1067_v44 }
 0x3cf   : > { %v1897_v45 = vpop.eup %1896 }
 0x3d0   : > { %v1070_v46 = vsel %vm1054_vm3, %v1897_v45, 0.0 }
 0x3d1   : > { %1071 = vadd.xlane.f32.xlu1 %v1070_v46 }
 0x456   : > { %v1069_v53 = vpop.xlane.xlu1 %1068 }
 0x457   : > { %1898 = vrcp.f32 %v1069_v53 }
 0x45a   : > { %v1072_v54 = vpop.xlane.xlu1 %1071 }
 0x45b   : > { %1900 = vrcp.f32 %v1072_v54 }
 0x464   : > { %v1899_v55 = vpop.eup %1898 }
 0x465   : > { %v1075_v56 = vmul.f32 %v1899_v55, %v1895_v43 }
 0x467   : > { %1769 = vmatprep.mubr.msk.f32.mxu1 %vm1054_vm3, %v1075_v56 }
 0x468   : > { %v1901_v57 = vpop.eup %1900 }
 0x469   : > { %v1076_v58 = vmul.f32 %v1901_v57, %v1897_v45 }
 0x46b   : > { %1770 = vmatmul.mubr.msk.f32.vlgmr.msra.gmra.mxu1 %vm1054_vm3, %v1076_v58 }
 0x46c   : > { %1773 = vmatpush3.msra.mxu1 %v1163_v52 }
 0x46d   : > { %1774 = vmatprep.subr.mxu1 %v1162_v59 }
 0x46e   : > { %1775 = vmatpush3.msra.mxu1 %v1162_v59 }
 0x46f   : > { %1776 = vmatprep.subr.mxu1 %v1161_v60 }
 0x470   : > { %1777 = vmatpush3.msra.mxu1 %v1161_v60 }
 0x471   : > { %1778 = vmatprep.subr.mxu1 %v1160_v61 }
 0x472   : > { %1779 = vmatpush3.msra.mxu1 %v1160_v61 }
 0x52b   : > { %v1771_v62 = vpop.f32.mrf.mxu1 }
 0x52d   : > { %v1149_v63 = vpop.f32.mrf.mxu1 }
 0x52e   : > { %1780 = vmatprep.mubr.msk.f32.mxu1 %vm951_vm0, %v1149_v63 }
 0x52f   : > { %1781 = vmatmul.mubr.msk.f32.vlgmr.msra.gmra.mxu1 %vm951_vm0, %v1771_v62 }
 0x5ef   : > { %v1782_v1 = vpop.f32.mrf.mxu1 }
 0x5f0   : > { %v1246_v3 = vadd.f32 %v1782_v1, %v1159_v0  ;;  %1252 = sbr.rel (%p1565_p8) target bundleno = 1533 (0x5fd), region = 72 }
 0x5f1   : > { %v1236_v4 = vpop.f32.mrf.mxu1 }
 0x5f2   : > { %1248 = vst [vmem:[#allocation3] sm:$0xff] %v1246_v3  ;;  %v1245_v5 = vadd.f32 %v1236_v4, %v1158_v2 }
 0x5f4   : > { %1247 = vst [vmem:[#allocation3 + $0x8] sm:$0xff] %v1245_v5 }
 0x5f9   : > { %v1254_v7 = vld [vmem:[#allocation3] sm:$0xff] }
 0x5fa   : > { %1256 = vst [vmem:[%s2320_s1 + $0x8] sm:$0xff] %v1254_v7 }
 0x5fb   : > { %v1253_v6 = vld [vmem:[#allocation3 + $0x8] sm:$0xff] }
 0x5fc   : > { %1255 = vst [vmem:[%s2320_s1] sm:$0xff] %v1253_v6 }
 0x5fd PF: > { %s2654_s3 = sadd.s32 4294967295, %s2074_s18   ;;  %s2655_s15 = sld [smem:[#allocation16_spill]] }
 0x5fe   : > { %s2435_s30 = sand.u32 1, %s2654_s3   ;;  %s1571_s27 = sshll.u32 %s2058_s14, 1 }
 0x5ff   : > { %s1299_s19 = sshll.u32 %s2322_s20, 4  ;;  %s2657_s12 = sld [smem:[#allocation35_spill]]  ;;  %s2440_s19 = int_to_ptr.vmem [resolvable:$true] %s1299_s19 }
 0x600   : > { %s2658_s25 = sld [smem:[#allocation36_spill]]  ;;  %s1263_s14 = scalar_lea.sflag [#allocation7], %s2435_s30 }
 0x601   : > { %s1902_s29 = scalar_lea.vmem %s2440_s19, 256  ;;  %s2076_s20 = smov [#allocation6]  }
 0x602   : > { %p1903_p9 = scmp.ne.s32.totalorder %s2440_s19, %s1902_s29  ;;  %s1906_s22 = sshll.u32 %s2076_s20, 4  ;;  %s1907_s22 = int_to_ptr.vmem [resolvable:$false] %s1906_s22 }
 0x603   : > { %s1572_s13 = sshll.u32 %s2655_s15, 3  ;;  %s1908_s3 = scalar_lea.vmem %s1907_s22, 512 }
 0x604   : > { %s1296_s21 = sadd.s32 %s1572_s13, %s1571_s27  ;;  %p1904_p10 = pnand %p1903_p9, %p2255_p12 }
 0x605   : > { %s1573_s0 = sshll.u32 %s1296_s21, 7  ;;  %p1909_p0 = scmp.lt.s32.totalorder %s2440_s19, %s1907_s22 }
 0x606   : > { %s2445_s28 = scalar_lea.hbm %s2657_s12, %s1573_s0  ;;  %s2659_s11 = smov %s2658_s25 }
 0x607   : > { %s2450_s16 = scalar_lea.hbm %s2658_s25, %s1573_s0  ;;  %p1905_p11 = pneg %p1904_p10 }
 0x608   : > { %p1910_p1 = scmp.lt.s32.totalorder %s1908_s3, %s1902_s29 }
 0x60a   : > { %p1911_p4 = por %p1910_p1, %p1909_p0 }
 0x60c   : > { %p1912_p2 = pnand %p1911_p4, %p1905_p11 }
 0x60e   : > { %1915 = shalt.err (!%p1912_p2)
}
 0x60f   : > { %s1916_s27 = scalar_lea.hbm %s2445_s28, 256  ;;  %s1920_s0 = scalar_lea.hbm %s2657_s12, 2048 }
 0x610   : > { %p1917_p5 = scmp.ne.s32.totalorder %s2445_s28, %s1916_s27  ;;  %p1921_p9 = scmp.lt.s32.totalorder %s2445_s28, %s2657_s12 }
 0x611   : > { %p1922_p10 = scmp.lt.s32.totalorder %s1920_s0, %s1916_s27 }
 0x612   : > { %p1918_p6 = pnand %p1917_p5, %p2255_p12 }
 0x613   : > { %p1923_p11 = por %p1922_p10, %p1921_p9 }
 0x614   : > { %p1919_p8 = pneg %p1918_p6 }
 0x616   : > { %p1924_p0 = pnand %p1923_p11, %p1919_p8 }
 0x618   : > { %1927 = shalt.err (!%p1924_p0)
}
 0x619   : > { %s2077_s24 = smov 128   ;;  %s2660_s26 = sld [smem:[#allocation14_spill]] }
 0x61a   : > { %s2078_s29 = smov 8   ;;  %s1584_s20 = sshll.u32 %s2655_s15, 8 }
 0x61b   : > { %1784 = dma.vmem_to_hbm [thread:$0]  (%p2255_p12), %s2440_s19, 256, %s2445_s28, %s1263_s14, %s2077_s24, %s2077_s24, %s2078_s29  }
 0x61c   : > { %s2662_s27 = sld [smem:[#allocation34_spill]]  ;;  %s1281_s0 = sshll.u32 %s2320_s1, 4  ;;  %s2485_s0 = int_to_ptr.vmem [resolvable:$true] %s1281_s0 }
 0x61d   : > { %s1317_s4 = sshll.u32 %s2324_s2, 4  ;;  %s1928_s6 = scalar_lea.vmem %s2485_s0, 256  ;;  %s1318_s4 = int_to_ptr.vmem [resolvable:$true] %s1317_s4 }
 0x61e   : > { %p1929_p1 = scmp.ne.s32.totalorder %s2485_s0, %s1928_s6  ;;  %s2079_s15 = smov [#allocation4]  }
 0x61f   : > { %s2664_s17 = sand.u32 1, %s2660_s26   ;;  %s1932_s19 = sshll.u32 %s2079_s15, 4  ;;  %s1933_s19 = int_to_ptr.vmem [resolvable:$false] %s1932_s19 }
 0x620   : > { %s1258_s5 = scalar_lea.sflag [#allocation5], %s2664_s17  ;;  %p1930_p4 = pnand %p1929_p1, %p2224_p3 }
 0x621   : > { %s1934_s28 = scalar_lea.vmem %s1933_s19, 512  ;;  %p1935_p5 = scmp.lt.s32.totalorder %s2485_s0, %s1933_s19 }
 0x622   : > { %s2663_s13 = smov %s2662_s27  ;;  %s2482_s21 = scalar_lea.hbm %s2662_s27, %s1584_s20 }
 0x623   : > { %p1931_p2 = pneg %p1930_p4  ;;  %p1936_p6 = scmp.lt.s32.totalorder %s1934_s28, %s1928_s6 }
 0x625   : > { %p1937_p8 = por %p1936_p6, %p1935_p5 }
 0x627   : > { %p1938_p9 = pnand %p1937_p8, %p1931_p2 }
 0x629   : > { %1941 = shalt.err (!%p1938_p9)
}
 0x62a   : > { %s1942_s1 = scalar_lea.hbm %s2482_s21, 256  ;;  %s1946_s22 = scalar_lea.hbm %s2663_s13, 512 }
 0x62b   : > { %p1943_p10 = scmp.ne.s32.totalorder %s2482_s21, %s1942_s1  ;;  %p1947_p1 = scmp.lt.s32.totalorder %s2482_s21, %s2663_s13 }
 0x62c   : > { %p1948_p4 = scmp.lt.s32.totalorder %s1946_s22, %s1942_s1 }
 0x62d   : > { %p1944_p11 = pnand %p1943_p10, %p2224_p3 }
 0x62e   : > { %p1949_p2 = por %p1948_p4, %p1947_p1 }
 0x62f   : > { %p1945_p0 = pneg %p1944_p11 }
 0x631   : > { %p1950_p5 = pnand %p1949_p2, %p1945_p0 }
 0x633   : > { %1953 = shalt.err (!%p1950_p5)
}
 0x634   : > { %1783 = dma.vmem_to_hbm [thread:$0]  (%p2224_p3), %s2485_s0, 256, %s2482_s21, %s1258_s5, %s2077_s24, %s2077_s24, %s2078_s29  }
 0x635   : > { %s1954_s6 = scalar_lea.vmem %s1318_s4, 256  ;;  %s2080_s17 = smov [#allocation8]  }
 0x636   : > { %p1955_p6 = scmp.ne.s32.totalorder %s1318_s4, %s1954_s6  ;;  %s1958_s15 = sshll.u32 %s2080_s17, 4  ;;  %s1959_s15 = int_to_ptr.vmem [resolvable:$false] %s1958_s15 }
 0x637   : > { %s1960_s19 = scalar_lea.vmem %s1959_s15, 512  ;;  %p1961_p10 = scmp.lt.s32.totalorder %s1318_s4, %s1959_s15 }
 0x638   : > { %p1956_p8 = pnand %p1955_p6, %p2255_p12  ;;  %p1962_p11 = scmp.lt.s32.totalorder %s1960_s19, %s1954_s6 }
 0x63a   : > { %p1957_p9 = pneg %p1956_p8  ;;  %p1963_p0 = por %p1962_p11, %p1961_p10 }
 0x63c   : > { %p1964_p1 = pnand %p1963_p0, %p1957_p9 }
 0x63e   : > { %1967 = shalt.err (!%p1964_p1)
}
 0x63f   : > { %s1968_s5 = scalar_lea.hbm %s2450_s16, 256  ;;  %s1972_s21 = scalar_lea.hbm %s2659_s11, 2048 }
 0x640   : > { %p1969_p3 = scmp.ne.s32.totalorder %s2450_s16, %s1968_s5  ;;  %p1973_p5 = scmp.lt.s32.totalorder %s2450_s16, %s2659_s11 }
 0x641   : > { %p1974_p6 = scmp.lt.s32.totalorder %s1972_s21, %s1968_s5 }
 0x642   : > { %p1970_p4 = pnand %p1969_p3, %p2255_p12 }
 0x643   : > { %p1975_p8 = por %p1974_p6, %p1973_p5 }
 0x644   : > { %p1971_p2 = pneg %p1970_p4 }
 0x646   : > { %p1976_p9 = pnand %p1975_p8, %p1971_p2 }
 0x648   : > { %1979 = shalt.err (!%p1976_p9)
}
 0x649   : > { %1785 = dma.vmem_to_hbm [thread:$0]  (%p2255_p12), %s1318_s4, 256, %s2450_s16, %s1263_s14, %s2077_s24, %s2077_s24, %s2078_s29  }
 0x64a PF: > { %s2665_s1 = sld [smem:[#allocation13_spill]]  ;;  %p1799_p10 = scmp.ge.s32.totalorder %s2074_s18, 2 }
 0x64c   : > { %p1790_p11 = pnand %p1799_p10, %p2243_p7 }
 0x64e   : > { %p1791_p0 = pneg %p1790_p11 }
 0x650   : > { %s1332_s20 = sand.u32 1, %s2665_s1  }
 0x651   : > { %s1333_s22 = scalar_lea.sflag [#allocation5], %s1332_s20 }
 0x652   : > { %2025 = dma.done.wait (%p1791_p0), %s1333_s22, 256  }
 0x653   : > { %2027 = vsyncadd (%p1791_p0), %s1333_s22, 4294967040  ;;  %s2667_s23 = sadd.s32 4294967294, %s2074_s18   ;;  %p1793_p1 = pnand %p1799_p10, %p2267_p13 }
 0x654   : > { %s1341_s27 = sand.u32 1, %s2667_s23  }
 0x655   : > { %p1794_p3 = pneg %p1793_p1  ;;  %s1342_s30 = scalar_lea.sflag [#allocation7], %s1341_s27 }
 0x657   : > { %2029 = dma.done.wait (%p1794_p3), %s1342_s30, 512  }
 0x658   : > { %2031 = vsyncadd (%p1794_p3), %s1342_s30, 4294966784  ;;  %s30_s18 = sadd.s32 1, %s2074_s18   ;;  %s2669_s25 = sld [smem:[#allocation11_spill]] }
 0x659   : > { %p27_p12 = scmp.ge.s32.totalorder %s30_s18, 10   ;;  %s2670_s26 = sld [smem:[#allocation12_spill]] }
 0x65a   : > { %s2671_s27 = sld [smem:[#allocation25_spill]] }
 0x65b   : > { %s2672_s28 = sld [smem:[#allocation14_spill]] }
 0x65c   : > { %s2673_s29 = sld [smem:[#allocation15_spill]] }
 0x65d   : > { %s2674_s30 = sld [smem:[#allocation24_spill]]  ;;  %29 = sbr.rel (!%p27_p12) target bundleno = 20 (0x14), region = 160 }
 0x65e   : > { %s2675_s14 = sld [smem:[#allocation17_spill]] }
 0x65f   : > { %s2676_s15 = sld [smem:[#allocation18_spill]] }
 0x660   : > { %s2677_s16 = sld [smem:[#allocation19_spill]] }
 0x661   : > { %s2678_s17 = sld [smem:[#allocation21_spill]] }
 0x662   :  { %1356 = vsyncpa [#allocation5], 1 }
 0x663   :  { %1358 = vsyncpa [#allocation5 + $0x1], 1 }
 0x664   :  { %1359 = vsyncpa [#allocation7], 1 }
 0x665   :  { %1361 = vsyncpa [#allocation7 + $0x1], 1 }

</bundles_post_ra>
